<compile_context>
chip_gen: v6e
topology: v6e:2x2x1
jax: 0.10.0
libtpu: 0.0.40
codegen_flags: <defaults>
</compile_context>

<pallas_src>
import functools
import math

import jax
import jax.numpy as jnp
from jax.experimental import pallas as pl
from jax.experimental.pallas import tpu as pltpu


def _round_up(x, m):
    return (x + m - 1) // m * m


def _pick_tile(dim, tile_max, granule):
    """Tile size for one dim: full dim if it fits (legal via the 'equal full
    array dim' layout escape), else a granule-aligned size that balances the
    strips and minimizes last-block waste."""
    if dim <= tile_max:
        return dim
    strips = pl.cdiv(dim, tile_max)
    return min(tile_max, _round_up(pl.cdiv(dim, strips), granule))


# ----------------------------- kernels --------------------------------------


def _masked_operands(x_ref, w_ref, k_rem):
    """Load x/w tiles; zero the K-tail on the last k step when K is ragged."""
    x = x_ref[...]
    w = w_ref[...]
    if k_rem:  # static: only compiled when K % tk != 0
        k = pl.program_id(2)
        last = pl.num_programs(2) - 1
        valid = jnp.where(k == last, k_rem, x.shape[1]).astype(jnp.int32)
        xi = jax.lax.broadcasted_iota(jnp.int32, x.shape, 1)
        wi = jax.lax.broadcasted_iota(jnp.int32, w.shape, 0)
        x = jnp.where(xi < valid, x, jnp.zeros_like(x))
        w = jnp.where(wi < valid, w, jnp.zeros_like(w))
    return x, w


def _linear_tiled_f32_kernel(x_ref, w_ref, b_ref, o_ref, *, k_rem):
    # Output block is resident across K (its index_map ignores k, k is the
    # innermost 'arbitrary' axis), so accumulate straight into it.  Bias is
    # folded into the first accumulation -- no init store + RMW.
    k = pl.program_id(2)
    x, w = _masked_operands(x_ref, w_ref, k_rem)
    part = jnp.dot(x, w, preferred_element_type=jnp.float32)

    @pl.when(k == 0)
    def _():
        o_ref[...] = part + b_ref[...].astype(jnp.float32)

    @pl.when(k != 0)
    def _():
        o_ref[...] += part


def _linear_tiled_acc_kernel(x_ref, w_ref, b_ref, o_ref, acc_ref, *, k_rem):
    # Narrow output dtype: accumulate in an f32 VMEM scratch, cast at the end.
    k = pl.program_id(2)
    x, w = _masked_operands(x_ref, w_ref, k_rem)
    part = jnp.dot(x, w, preferred_element_type=jnp.float32)

    @pl.when(k == 0)
    def _():
        acc_ref[...] = part

    @pl.when(k != 0)
    def _():
        acc_ref[...] += part

    @pl.when(k == pl.num_programs(2) - 1)
    def _():
        o_ref[...] = (acc_ref[...] + b_ref[...].astype(jnp.float32)).astype(o_ref.dtype)


# ----------------------------- wrapper ---------------------------------------

# Keep the double-buffered footprint under the 16 MiB scoped-VMEM default on
# v5e (v6e/v7x default to 32 MiB of 128/64 MiB physical).
_VMEM_BUDGET_BYTES = 14 * 1024 * 1024


@functools.partial(jax.jit, static_argnames=("tm", "tn", "tk", "compute_dtype"))
def my_linear(x, w, b, *, tm=512, tn=512, tk=1024, compute_dtype=None):
    """y = x @ w + b, matching PyTorch MyLinear.forward."""
    M, K = x.shape
    K2, N = w.shape
    assert K == K2 and b.shape == (N,)

    out_dtype = x.dtype
    if compute_dtype is not None:
        # Opt-in narrow MXU operands (bf16 on v6e/v7x); f32 accumulation is
        # preserved via preferred_element_type.  Changes numerics vs the f32
        # PyTorch reference, so it stays opt-in.
        x = x.astype(compute_dtype)
        w = w.astype(compute_dtype)
    in_size = jnp.dtype(x.dtype).itemsize
    out_size = jnp.dtype(out_dtype).itemsize
    gran_m = {1: 32, 2: 16}.get(in_size, 8)  # match native packed sublane tile

    tm_eff = _pick_tile(M, tm, gran_m)
    tn_eff = _pick_tile(N, tn, 128)   # lane-dense output columns
    tk_eff = _pick_tile(K, tk, 128)   # lane-dense contraction tile, kept large

    # v7x megacore balance: make sure there are >= 2 parallel (M,N) blocks
    # when it is cheap to do so (costs ~1 extra grid step on 1-TC chips).
    if pl.cdiv(M, tm_eff) * pl.cdiv(N, tn_eff) == 1 and N >= 256:
        tn_eff = _round_up(pl.cdiv(N, 2), 128)

    needs_scratch = out_dtype != jnp.float32

    def _footprint(tm_, tn_, tk_):
        f = 2 * (tm_ * tk_ + tk_ * tn_) * in_size        # x, w double-buffered
        f += 2 * tn_ * 4                                  # bias row
        f += 2 * tm_ * tn_ * out_size                     # output block
        if needs_scratch:
            f += tm_ * tn_ * 4                            # f32 accumulator
        return f

    while _footprint(tm_eff, tn_eff, tk_eff) > _VMEM_BUDGET_BYTES and tk_eff > 128:
        tk_eff = max(128, _round_up(tk_eff // 2, 128))
    while _footprint(tm_eff, tn_eff, tk_eff) > _VMEM_BUDGET_BYTES and tn_eff > 128:
        tn_eff = max(128, _round_up(tn_eff // 2, 128))
    while _footprint(tm_eff, tn_eff, tk_eff) > _VMEM_BUDGET_BYTES and tm_eff > gran_m:
        tm_eff = max(gran_m, _round_up(tm_eff // 2, gran_m))

    grid = (pl.cdiv(M, tm_eff), pl.cdiv(N, tn_eff), pl.cdiv(K, tk_eff))
    k_rem = K % tk_eff  # 0 -> no K-tail masking compiled into the kernel

    b2d = b.reshape(1, N)
    cost = pl.CostEstimate(
        flops=2 * M * N * K,
        transcendentals=0,
        bytes_accessed=(M * K + K * N) * in_size
        + M * N * out_size
        + N * jnp.dtype(b.dtype).itemsize,
    )

    if needs_scratch:
        kernel = functools.partial(_linear_tiled_acc_kernel, k_rem=k_rem)
        scratch = [pltpu.VMEM((tm_eff, tn_eff), jnp.float32)]
    else:
        kernel = functools.partial(_linear_tiled_f32_kernel, k_rem=k_rem)
        scratch = []

    return pl.pallas_call(
        kernel,
        out_shape=jax.ShapeDtypeStruct((M, N), out_dtype),
        grid_spec=pltpu.PrefetchScalarGridSpec(
            num_scalar_prefetch=0,
            grid=grid,
            in_specs=[
                pl.BlockSpec((tm_eff, tk_eff), lambda i, j, k: (i, k)),  # x tile
                pl.BlockSpec((tk_eff, tn_eff), lambda i, j, k: (k, j)),  # w tile
                pl.BlockSpec((1, tn_eff), lambda i, j, k: (0, j)),       # bias row
            ],
            out_specs=pl.BlockSpec((tm_eff, tn_eff), lambda i, j, k: (i, j)),
            scratch_shapes=scratch,
        ),
        compiler_params=pltpu.CompilerParams(
            dimension_semantics=("parallel", "parallel", "arbitrary")
        ),
        cost_estimate=cost,
    )(x, w, b2d)


# ------------------------------- demo ----------------------------------------

if __name__ == "__main__":
    key = jax.random.PRNGKey(0)
    kx, kw, kx2, kw2, kb2 = jax.random.split(key, 5)

    # 1) Shapes implied by the module: batch=8, in_features=32, out_features=32.
    #    Deterministic init mirroring MyLinear.reset_parameters():
    #    w ~ U(-k, k) with k = sqrt(1/in_features), b = 0.
    batch, in_features, out_features = 8, 32, 32
    k = math.sqrt(1.0 / in_features)
    w = jax.random.uniform(
        kw, (in_features, out_features), dtype=jnp.float32, minval=-k, maxval=k
    )
    b = jnp.zeros((out_features,), dtype=jnp.float32)
    x = jax.random.normal(kx, (batch, in_features), dtype=jnp.float32)

    out = jax.block_until_ready(my_linear(x, w, b))
    ref = x @ w + b
    assert out.shape == (batch, out_features)
    assert jnp.allclose(out, ref, atol=1e-5, rtol=1e-5), "small-shape mismatch"

    # 2) Ragged M/N/K: exercises adaptive tiles, in-kernel K-tail masking
    #    (1300 % 768 != 0) and dropped-edge M/N blocks -- no wrapper pad/slice.
    M2, K2, N2 = 520, 1300, 640
    k2 = math.sqrt(1.0 / K2)
    w2 = jax.random.uniform(kw2, (K2, N2), dtype=jnp.float32, minval=-k2, maxval=k2)
    b2 = 0.1 * jax.random.normal(kb2, (N2,), dtype=jnp.float32)
    x2 = jax.random.normal(kx2, (M2, K2), dtype=jnp.float32)

    out2 = jax.block_until_ready(my_linear(x2, w2, b2))
    ref2 = x2 @ w2 + b2
    assert out2.shape == (M2, N2)
    assert jnp.allclose(out2, ref2, atol=2e-2, rtol=2e-2), "tiled-path mismatch"

    print("KERNEL_OK")
</pallas_src>

<mosaic_0001>
module attributes {stable_mosaic.version = 11 : i64} {
  func.func @_linear_tiled_f32_kernel(%arg0: i32, %arg1: i32, %arg2: i32, %arg3: memref<8x32xf32, #tpu.memory_space<vmem>>, %arg4: memref<32x32xf32, #tpu.memory_space<vmem>>, %arg5: memref<1x32xf32, #tpu.memory_space<vmem>>, %arg6: memref<8x32xf32, #tpu.memory_space<vmem>>) attributes {dimension_semantics = [#tpu.dimension_semantics<parallel>, #tpu.dimension_semantics<parallel>, #tpu.dimension_semantics<arbitrary>], iteration_bounds = array<i64: 1, 1, 1>, scalar_prefetch = 0 : i64, scratch_operands = 0 : i64, tpu.core_type = #tpu.core_type<tc>, window_params = [{transform_indices = @transform_0, window_bounds = array<i64: 8, 32>}, {transform_indices = @transform_1, window_bounds = array<i64: 32, 32>}, {transform_indices = @transform_2, window_bounds = array<i64: 1, 32>}, {transform_indices = @transform_3, window_bounds = array<i64: 8, 32>}]} {
    %c0 = arith.constant 0 : index
    %c0_0 = arith.constant 0 : index
    %0 = vector.load %arg3[%c0, %c0_0] : memref<8x32xf32, #tpu.memory_space<vmem>>, vector<8x32xf32>
    %c0_1 = arith.constant 0 : index
    %c0_2 = arith.constant 0 : index
    %1 = vector.load %arg4[%c0_1, %c0_2] : memref<32x32xf32, #tpu.memory_space<vmem>>, vector<32x32xf32>
    %cst = arith.constant dense<0.000000e+00> : vector<8x32xf32>
    %2 = tpu.matmul %0, %1, %cst {dimension_numbers = #tpu.dot_dimension_numbers<[1], [0], [0], [1], [0, 0, 1, 1], [], []>} : vector<8x32xf32>, vector<32x32xf32>, vector<8x32xf32> -> vector<8x32xf32>
    %c0_i32 = arith.constant 0 : i32
    %3 = arith.cmpi eq, %arg2, %c0_i32 : i32
    %4 = arith.extui %3 : i1 to i32
    %c0_i32_3 = arith.constant 0 : i32
    %5 = arith.cmpi ne, %4, %c0_i32_3 : i32
    scf.if %5 {
      %c0_6 = arith.constant 0 : index
      %c0_7 = arith.constant 0 : index
      %9 = vector.load %arg5[%c0_6, %c0_7] : memref<1x32xf32, #tpu.memory_space<vmem>>, vector<1x32xf32>
      %10 = vector.broadcast %9 : vector<1x32xf32> to vector<8x32xf32>
      %11 = arith.addf %2, %10 : vector<8x32xf32>
      %c0_8 = arith.constant 0 : index
      %c0_9 = arith.constant 0 : index
      %12 = vector.load %arg6[%c0_8, %c0_9] : memref<8x32xf32, #tpu.memory_space<vmem>>, vector<8x32xf32>
      tpu.vector_store %arg6[%c0_8, %c0_9], %11 {strides = array<i32>} : memref<8x32xf32, #tpu.memory_space<vmem>>, vector<8x32xf32>,
    } else {
    }
    %c0_i32_4 = arith.constant 0 : i32
    %6 = arith.cmpi ne, %arg2, %c0_i32_4 : i32
    %7 = arith.extui %6 : i1 to i32
    %c0_i32_5 = arith.constant 0 : i32
    %8 = arith.cmpi ne, %7, %c0_i32_5 : i32
    scf.if %8 {
      %c0_6 = arith.constant 0 : index
      %c0_7 = arith.constant 0 : index
      %9 = vector.load %arg6[%c0_6, %c0_7] : memref<8x32xf32, #tpu.memory_space<vmem>>, vector<8x32xf32>
      %10 = arith.addf %9, %2 : vector<8x32xf32>
      %c0_8 = arith.constant 0 : index
      %c0_9 = arith.constant 0 : index
      %11 = vector.load %arg6[%c0_8, %c0_9] : memref<8x32xf32, #tpu.memory_space<vmem>>, vector<8x32xf32>
      tpu.vector_store %arg6[%c0_8, %c0_9], %10 {strides = array<i32>} : memref<8x32xf32, #tpu.memory_space<vmem>>, vector<8x32xf32>,
    } else {
    }
    return
  }
  func.func @transform_0(%arg0: i32, %arg1: i32, %arg2: i32) -> (i32, i32) {
    %c0_i32 = arith.constant 0 : i32
    return %arg0, %arg2 : i32, i32
  }
  func.func @transform_1(%arg0: i32, %arg1: i32, %arg2: i32) -> (i32, i32) {
    %c0_i32 = arith.constant 0 : i32
    return %arg2, %arg1 : i32, i32
  }
  func.func @transform_2(%arg0: i32, %arg1: i32, %arg2: i32) -> (i32, i32) {
    %c0_i32 = arith.constant 0 : i32
    %c0_i32_0 = arith.constant 0 : i32
    return %c0_i32, %arg1 : i32, i32
  }
  func.func @transform_3(%arg0: i32, %arg1: i32, %arg2: i32) -> (i32, i32) {
    %c0_i32 = arith.constant 0 : i32
    return %arg0, %arg1 : i32, i32
  }
}

</mosaic_0001>

<bundles_post_ra>
// kernel: my_linear.1
= control target key start
LH: loop header
LB: loop body
LE: loop exit
PB: predicated region body
PF: predicated region fallthrough
CT: control target
= control target key end

     0   :  { %8 = vsyncpa [#allocation3], 0  ;;  %s286_s0 = inlined_call_operand.hbm [shape: f32[8,32], index: 0, kind: input, shape index: {}]   ;;  %s287_s1 = inlined_call_operand.hbm [shape: f32[32,32], index: 1, kind: input, shape index: {}]   ;;  %s288_s2 = inlined_call_operand.vmem [shape: f32[1,32], index: 2, kind: input, shape index: {}]   ;;  %s289_s3 = inlined_call_operand.hbm [shape: f32[8,32], index: 3, kind: output, shape index: {}]  }
   0x1   :  { %9 = vsyncpa [#allocation6], 0 }
   0x2   :  { %10 = vsyncpa [#allocation4], 0  ;;  %s247_s12 = smov [#allocation2]   ;;  %s248_s14 = smov [#allocation5]  }
   0x3   :  { %s17_s13 = sshll.u32 %s247_s12, 4  ;;  %s26_s15 = sshll.u32 %s248_s14, 4  ;;  %s18_s13 = int_to_ptr.vmem [resolvable:$true] %s17_s13  ;;  %s27_s15 = int_to_ptr.vmem [resolvable:$true] %s26_s15 }
   0x4   :  { %s189_s16 = scalar_lea.vmem %s18_s13, 128  ;;  %p194_p1 = scmp.lt.s32.totalorder %s18_s13, %s18_s13 }
   0x5   :  { %p190_p0 = scmp.ne.s32.totalorder %s18_s13, %s189_s16  ;;  %p195_p2 = scmp.lt.s32.totalorder %s189_s16, %s189_s16 }
   0x7   :  { %p196_p3 = por %p195_p2, %p194_p1 }
   0x9   :  { %p197_p4 = pnand %p196_p3, %p190_p0 }
   0xb   :  { %200 = shalt.err (!%p197_p4)
}
   0xc   :  { %20 = dma.hbm_to_vmem [thread:$0]  %s286_s0, 128, %s18_s13, [#allocation3]  }
   0xd   :  { %s209_s19 = scalar_lea.vmem %s27_s15, 512  ;;  %p214_p6 = scmp.lt.s32.totalorder %s27_s15, %s27_s15 }
   0xe   :  { %p210_p5 = scmp.ne.s32.totalorder %s27_s15, %s209_s19  ;;  %p215_p7 = scmp.lt.s32.totalorder %s209_s19, %s209_s19 }
  0x10   :  { %p216_p8 = por %p215_p7, %p214_p6 }
  0x12   :  { %p217_p9 = pnand %p216_p8, %p210_p5 }
  0x14   :  { %220 = shalt.err (!%p217_p9)
}
  0x15   :  { %s249_s20 = smov 128   ;;  %s250_s21 = smov 8  }
  0x16   :  { %32 = dma.hbm_to_vmem [thread:$0]  %s287_s1, 512, %s27_s15, [#allocation6], %s249_s20, %s249_s20, %s250_s21  }
  0x17   :  { %241 = dma.done.wait [#allocation3], 128  }
  0x18   :  { %242 = vsyncadd [#allocation3], 4294967168 }
  0x19   :  { %243 = dma.done.wait [#allocation6], 512  }
  0x1a   :  { %244 = vsyncadd [#allocation6], 4294966784  ;;  %v251_v0 = vmov 0.0   ;;  %vm252_vm0 = vmmov 0   ;;  %v45_v1 = vld [vmem:[#allocation5 + $0x18] sm:$0xff]  ;;  %v44_v2 = vld [vmem:[#allocation5 + $0x10] sm:$0xff] }
  0x1b   :  { %163 = vmatprep.subr.mxu0 %v251_v0  ;;  %171 = vmatprep.mubr.msk.f32.mxu0 %vm252_vm0, %v251_v0  ;;  %v43_v3 = vld [vmem:[#allocation5 + $0x8] sm:$0xff]  ;;  %v42_v4 = vld [vmem:[#allocation5] sm:$0xff]  ;;  %v41_v5 = vld [vmem:[#allocation2] sm:$0xff]  ;;  %vm46_vm1 = vcmask 261120   ;;  %s253_s24 = smov [#allocation7]  }
  0x1c   :  { %164 = vmatpush3.msra.mxu0 %v45_v1  ;;  %v157_v6 = vld [vmem:[%s288_s2] ss:$0 sm:$0xff]  ;;  %s146_s25 = sshll.u32 %s253_s24, 4  ;;  %s147_s25 = int_to_ptr.vmem [resolvable:$true] %s146_s25 }
  0x1d   :  { %165 = vmatprep.subr.mxu0 %v251_v0  ;;  %s221_s26 = scalar_lea.vmem %s147_s25, 128  ;;  %p226_p11 = scmp.lt.s32.totalorder %s147_s25, %s147_s25 }
  0x1e   :  { %166 = vmatpush3.msra.mxu0 %v44_v2  ;;  %p222_p10 = scmp.ne.s32.totalorder %s147_s25, %s221_s26  ;;  %p227_p12 = scmp.lt.s32.totalorder %s221_s26, %s221_s26 }
  0x1f   :  { %167 = vmatprep.subr.mxu0 %v251_v0 }
  0x20   :  { %168 = vmatpush3.msra.mxu0 %v43_v3  ;;  %p228_p13 = por %p227_p12, %p226_p11 }
  0x21   :  { %169 = vmatprep.subr.mxu0 %v251_v0 }
  0x22   :  { %170 = vmatpush3.msra.mxu0 %v42_v4  ;;  %p229_p0 = pnand %p228_p13, %p222_p10 }
  0x23   :  { %172 = vmatmul.mubr.msk.f32.vlgmr.msra.gmra.mxu0 %vm46_vm1, %v41_v5 }
  0xe3   :  { %v116_v7 = vpop.f32.mrf.mxu0 }
  0xe4   :  { %v131_v8 = vadd.f32 %v157_v6, %v116_v7 }
  0xe5   :  { %v173_v9 = vpop.f32.mrf.mxu0 }
  0xe6   :  { %132 = vst.msk [vmem:[#allocation7] sm:$0xff] %vm46_vm1, %v131_v8 }
  0xe7   :  { %232 = shalt.err (!%p229_p0)
}
  0xe8   :  { %149 = dma.vmem_to_hbm [thread:$0]  %s147_s25, 128, %s289_s3, [#allocation4]  }
  0xe9   :  { %245 = dma.done.wait [#allocation4], 128  }
  0xea   :  { %246 = vsyncadd [#allocation4], 4294967168 }
  0xeb   :  { %153 = vsyncpa [#allocation3], 1 }
  0xec   :  { %154 = vsyncpa [#allocation6], 1 }
  0xed   :  { %155 = vsyncpa [#allocation4], 1 }

</bundles_post_ra>
